<compile_context>
chip_gen: v5e
topology: v5e:2x2
jax: 0.10.0
libtpu: 0.0.40
codegen_flags: <defaults>
</compile_context>

<pallas_src>
import math

import jax
import jax.numpy as jnp
from jax.experimental import pallas as pl
from jax.experimental.pallas import tpu as pltpu


_LANE = 128     # last-dim padding target (vreg lane width)
_SUBLANE = 8    # batch-tile granularity (vreg sublane width)

# Lazily probed: does this JAX build accept pl.Buffered(1) for resident specs?
_SINGLE_BUFFER_WEIGHTS = None


def _round_up(x, m):
    return ((x + m - 1) // m) * m


def _actor_kernel(ma_ref, s_ref, w1_ref, b1_ref, w2_ref, b2_ref, w3_ref, b3_ref,
                  out_ref):
    """One batch tile of: max_action * tanh(relu(relu(s@W1+b1)@W2+b2)@W3+b3)."""
    max_action = ma_ref[0, 0]                     # f32 scalar from SMEM

    # Layer 1: Linear + ReLU  (bf16 MXU inputs, f32 accumulation + epilogue)
    h1 = jnp.dot(s_ref[...], w1_ref[...], preferred_element_type=jnp.float32)
    h1 = jnp.maximum(h1 + b1_ref[...], 0.0)

    # Layer 2: Linear + ReLU
    h2 = jnp.dot(h1.astype(w2_ref.dtype), w2_ref[...],
                 preferred_element_type=jnp.float32)
    h2 = jnp.maximum(h2 + b2_ref[...], 0.0)

    # Layer 3: Linear + tanh, scaled by max_action (f32 epilogue, EUP tanh)
    h3 = jnp.dot(h2.astype(w3_ref.dtype), w3_ref[...],
                 preferred_element_type=jnp.float32)
    out_ref[...] = (max_action * jnp.tanh(h3 + b3_ref[...])).astype(out_ref.dtype)


def prepare_actor_params(params, matmul_dtype=jnp.bfloat16):
    """Pad feature dims to 128 lanes and cast weights to the MXU dtype ONCE.

    Call this outside the acting/training loop and pass the result to
    actor_forward so each forward call does not re-emit pad+convert XLA ops
    (extra HBM round trips) for unchanged parameters.

    params: dict with w1 (state_dim, H), b1 (1, H), w2 (H, H), b2 (1, H),
            w3 (H, action_dim), b3 (1, action_dim) -- (in_features, out_features).
    """
    state_dim, hidden = params["w1"].shape
    action_dim = params["w3"].shape[1]
    s_p = _round_up(state_dim, _LANE)
    h_p = _round_up(hidden, _LANE)
    a_p = _round_up(action_dim, _LANE)

    def pad2(x, rows, cols, dtype):
        return jnp.pad(x, ((0, rows - x.shape[0]),
                           (0, cols - x.shape[1]))).astype(dtype)

    # Zero padding is mathematically exact: padded rows/columns contribute 0
    # through every Linear/ReLU and padded action columns are sliced away.
    return {
        "prepared": True,
        "dims": (state_dim, hidden, action_dim),
        "padded_dims": (s_p, h_p, a_p),
        "matmul_dtype": jnp.dtype(matmul_dtype),
        "w1": pad2(params["w1"], s_p, h_p, matmul_dtype),
        "w2": pad2(params["w2"], h_p, h_p, matmul_dtype),
        "w3": pad2(params["w3"], h_p, a_p, matmul_dtype),
        "b1": pad2(params["b1"], 1, h_p, jnp.float32),
        "b2": pad2(params["b2"], 1, h_p, jnp.float32),
        "b3": pad2(params["b3"], 1, a_p, jnp.float32),
    }


def _choose_batch_tiling(batch, max_block_batch, min_rows_to_split):
    """Pick a batch tile: few, large tiles; an even grid when big enough."""
    b8 = _round_up(batch, _SUBLANE)
    if b8 < min_rows_to_split:
        tm = b8                                   # single tile, grid of 1
    else:
        # At least 2 steps (so both v7x TensorCores get work) and an even
        # number of steps; each tile as large as possible (capped) to
        # amortize the ~0.35 us per-step pipeline overhead.
        n = max(2, pl.cdiv(b8, max_block_batch))
        n = _round_up(n, 2)
        tm = _round_up(pl.cdiv(b8, n), _SUBLANE)
    b_pad = _round_up(b8, tm)
    return tm, b_pad, b_pad // tm


def actor_forward(s, params, max_action, *, max_block_batch=2048,
                  min_rows_to_split=16, matmul_dtype=jnp.bfloat16,
                  out_dtype=jnp.float32, unpad=True):
    """Pallas-backed Actor forward.

    s:        (B, state_dim) float32
    params:   raw param dict (see init_actor_params) or the output of
              prepare_actor_params (preferred: pad/cast hoisted out of loop).
    out_dtype: jnp.bfloat16 halves output writeback bytes (v5e-friendly).
    unpad:    False returns the padded (B_p, A_p) slab (no extra HBM copy);
              slice/consume it inside the caller's jit instead.
    Returns   (B, action_dim) out_dtype (or padded slab if unpad=False).
    """
    global _SINGLE_BUFFER_WEIGHTS

    if not (isinstance(params, dict) and params.get("prepared", False)):
        params = prepare_actor_params(params, matmul_dtype)
    state_dim, hidden, action_dim = params["dims"]
    s_p_dim, h_p, a_p = params["padded_dims"]
    mm_dtype = params["matmul_dtype"]

    batch = s.shape[0]
    assert s.shape[1] == state_dim, (s.shape, state_dim)

    tm, b_pad, n_tiles = _choose_batch_tiling(batch, max_block_batch,
                                              min_rows_to_split)
    grid = (n_tiles,)

    s_padded = jnp.pad(s, ((0, b_pad - batch),
                           (0, s_p_dim - state_dim))).astype(mm_dtype)

    # max_action as an SMEM scalar (sweeping it never retraces the kernel).
    ma = jnp.asarray([[max_action]], dtype=jnp.float32)

    # Advisory cost estimate: count the PADDED work actually performed.
    nbytes = lambda a: a.size * a.dtype.itemsize
    out_itemsize = jnp.dtype(out_dtype).itemsize
    flops = 2 * b_pad * (s_p_dim * h_p + h_p * h_p + h_p * a_p)
    bytes_accessed = (nbytes(s_padded)
                      + sum(nbytes(params[k]) for k in
                            ("w1", "w2", "w3", "b1", "b2", "b3"))
                      + b_pad * a_p * out_itemsize)
    cost = pl.CostEstimate(flops=int(flops),
                           transcendentals=int(b_pad * a_p),
                           bytes_accessed=int(bytes_accessed))

    # Per-step VMEM estimate; only override the scoped default when a large
    # batch tile / wide hidden could exceed v5e's 16 MiB default.
    mm_itemsize = jnp.dtype(mm_dtype).itemsize
    weight_bytes = ((s_p_dim * h_p + h_p * h_p + h_p * a_p) * mm_itemsize
                    + (2 * h_p + a_p) * 4)
    act_bytes = tm * (2 * s_p_dim * mm_itemsize      # s tile, double-buffered
                      + 2 * a_p * out_itemsize       # out tile, double-buffered
                      + 2 * h_p * 4)                 # f32 h1/h2 temporaries
    vmem_est = 2 * weight_bytes + act_bytes
    vmem_limit = None
    if vmem_est > 12 * 1024 * 1024:
        vmem_limit = min(int(vmem_est * 3 // 2), 64 * 1024 * 1024)

    def build(single_buffer_weights):
        if single_buffer_weights:
            # Constant index_map -> fetched once; a second pipeline buffer is
            # pure waste, so request single buffering.
            def resident(shape):
                return pl.BlockSpec(shape, lambda i: (0, 0),
                                    pipeline_mode=pl.Buffered(1))
        else:
            def resident(shape):
                return pl.BlockSpec(shape, lambda i: (0, 0))
        return pl.pallas_call(
            _actor_kernel,
            out_shape=jax.ShapeDtypeStruct((b_pad, a_p), out_dtype),
            grid=grid,
            in_specs=[
                pl.BlockSpec(memory_space=pltpu.MemorySpace.SMEM),  # max_action
                pl.BlockSpec((tm, s_p_dim), lambda i: (i, 0)),      # s tile
                resident((s_p_dim, h_p)), resident((1, h_p)),       # W1, b1
                resident((h_p, h_p)), resident((1, h_p)),           # W2, b2
                resident((h_p, a_p)), resident((1, a_p)),           # W3, b3
            ],
            out_specs=pl.BlockSpec((tm, a_p), lambda i: (i, 0)),
            compiler_params=pltpu.CompilerParams(
                dimension_semantics=("parallel",),
                vmem_limit_bytes=vmem_limit),
            cost_estimate=cost,
        )

    args = (ma, s_padded, params["w1"], params["b1"], params["w2"],
            params["b2"], params["w3"], params["b3"])

    if _SINGLE_BUFFER_WEIGHTS is None:
        # Probe once: if this JAX build rejects pl.Buffered(1) on a resident
        # BlockSpec, silently fall back to default (double) buffering.
        try:
            out_padded = build(True)(*args)
            _SINGLE_BUFFER_WEIGHTS = True
        except Exception:  # noqa: BLE001 - any construction/lowering failure
            _SINGLE_BUFFER_WEIGHTS = False
            out_padded = build(False)(*args)
    else:
        out_padded = build(_SINGLE_BUFFER_WEIGHTS)(*args)

    if not unpad:
        return out_padded
    if b_pad == batch and a_p == action_dim:
        return out_padded
    # NOTE: this slice is a separate XLA copy; prefer unpad=False and fusing
    # the slice into the consuming jit for us-scale end-to-end budgets.
    return out_padded[:batch, :action_dim]


def init_actor_params(key, state_dim, hidden_width, action_dim):
    """Deterministic init mimicking PyTorch nn.Linear default
    (U[-1/sqrt(fan_in), 1/sqrt(fan_in)]). Weights stored transposed:
    (in_features, out_features)."""
    keys = jax.random.split(key, 6)

    def linear(kw, kb, fan_in, fan_out):
        bound = 1.0 / math.sqrt(fan_in)
        w = jax.random.uniform(kw, (fan_in, fan_out), jnp.float32, -bound, bound)
        b = jax.random.uniform(kb, (1, fan_out), jnp.float32, -bound, bound)
        return w, b

    w1, b1 = linear(keys[0], keys[1], state_dim, hidden_width)
    w2, b2 = linear(keys[2], keys[3], hidden_width, hidden_width)
    w3, b3 = linear(keys[4], keys[5], hidden_width, action_dim)
    return {"w1": w1, "b1": b1, "w2": w2, "b2": b2, "w3": w3, "b3": b3}


def actor_forward_ref(s, params, max_action):
    """Pure-JAX (float32) reference for correctness checking."""
    h1 = jnp.maximum(s @ params["w1"] + params["b1"], 0.0)
    h2 = jnp.maximum(h1 @ params["w2"] + params["b2"], 0.0)
    return max_action * jnp.tanh(h2 @ params["w3"] + params["b3"])


if __name__ == "__main__":
    batch = 2
    state_dim = 16
    hidden_width = 32
    action_dim = 4
    max_action = 2.0

    key = jax.random.PRNGKey(0)
    k_s, k_p, k_s2 = jax.random.split(key, 3)

    s = jax.random.normal(k_s, (batch, state_dim), jnp.float32)
    params = init_actor_params(k_p, state_dim, hidden_width, action_dim)

    # Pad/cast parameters ONCE (hoisted out of the per-call hot path).
    prepared_bf16 = prepare_actor_params(params, jnp.bfloat16)
    prepared_f32 = prepare_actor_params(params, jnp.float32)

    a_ref = actor_forward_ref(s, params, max_action)

    # bf16 MXU path (production default). bf16 inputs + f32 accumulation give
    # ~1e-3 deviations from the pure-f32 reference; tolerance sized accordingly.
    a = jax.block_until_ready(actor_forward(s, prepared_bf16, max_action))
    assert a.shape == (batch, action_dim), a.shape
    assert jnp.allclose(a, a_ref, atol=2e-2, rtol=2e-2), "bf16 path mismatch"

    # Pure-f32 kernel path must match the reference tightly.
    a_f32 = jax.block_until_ready(actor_forward(s, prepared_f32, max_action))
    assert jnp.allclose(a_f32, a_ref, atol=1e-5, rtol=1e-5), "f32 path mismatch"

    # Larger batch exercises the multi-tile path (even grid -> v7x megacore)
    # and padded batch rows being sliced away.
    batch2 = 300
    s2 = jax.random.normal(k_s2, (batch2, state_dim), jnp.float32)
    a2_ref = actor_forward_ref(s2, params, max_action)
    a2 = jax.block_until_ready(actor_forward(s2, prepared_bf16, max_action))
    assert a2.shape == (batch2, action_dim), a2.shape
    assert jnp.allclose(a2, a2_ref, atol=2e-2, rtol=2e-2), "multi-tile mismatch"

    # v5e-friendly writeback: bf16 padded output slab, no trailing slice copy.
    a3_pad = jax.block_until_ready(
        actor_forward(s2, prepared_bf16, max_action,
                      out_dtype=jnp.bfloat16, unpad=False))
    a3 = a3_pad[:batch2, :action_dim].astype(jnp.float32)
    assert jnp.allclose(a3, a2_ref, atol=3e-2, rtol=3e-2), "bf16-out mismatch"

    print("KERNEL_OK")
</pallas_src>

<mosaic_0001>
module attributes {stable_mosaic.version = 11 : i64} {
  func.func @_actor_kernel(%arg0: i32, %arg1: memref<1x1xf32, #tpu.memory_space<smem>>, %arg2: memref<8x128xbf16, #tpu.memory_space<vmem>>, %arg3: memref<128x128xbf16, #tpu.memory_space<vmem>>, %arg4: memref<1x128xf32, #tpu.memory_space<vmem>>, %arg5: memref<128x128xbf16, #tpu.memory_space<vmem>>, %arg6: memref<1x128xf32, #tpu.memory_space<vmem>>, %arg7: memref<128x128xbf16, #tpu.memory_space<vmem>>, %arg8: memref<1x128xf32, #tpu.memory_space<vmem>>, %arg9: memref<8x128xf32, #tpu.memory_space<vmem>>) attributes {dimension_semantics = [#tpu.dimension_semantics<parallel>], iteration_bounds = array<i64: 1>, scalar_prefetch = 0 : i64, scratch_operands = 0 : i64, tpu.core_type = #tpu.core_type<tc>, window_params = [{transform_indices = @transform_0, window_bounds = array<i64: 1, 1>}, {transform_indices = @transform_1, window_bounds = array<i64: 8, 128>}, {pipeline_mode = #tpu.pipeline_mode<synchronous>, transform_indices = @transform_2, window_bounds = array<i64: 128, 128>}, {pipeline_mode = #tpu.pipeline_mode<synchronous>, transform_indices = @transform_3, window_bounds = array<i64: 1, 128>}, {pipeline_mode = #tpu.pipeline_mode<synchronous>, transform_indices = @transform_4, window_bounds = array<i64: 128, 128>}, {pipeline_mode = #tpu.pipeline_mode<synchronous>, transform_indices = @transform_5, window_bounds = array<i64: 1, 128>}, {pipeline_mode = #tpu.pipeline_mode<synchronous>, transform_indices = @transform_6, window_bounds = array<i64: 128, 128>}, {pipeline_mode = #tpu.pipeline_mode<synchronous>, transform_indices = @transform_7, window_bounds = array<i64: 1, 128>}, {transform_indices = @transform_8, window_bounds = array<i64: 8, 128>}]} {
    %c0 = arith.constant 0 : index
    %c0_0 = arith.constant 0 : index
    %0 = memref.load %arg1[%c0, %c0_0] : memref<1x1xf32, #tpu.memory_space<smem>>
    %c0_1 = arith.constant 0 : index
    %c0_2 = arith.constant 0 : index
    %1 = vector.load %arg2[%c0_1, %c0_2] : memref<8x128xbf16, #tpu.memory_space<vmem>>, vector<8x128xbf16>
    %c0_3 = arith.constant 0 : index
    %c0_4 = arith.constant 0 : index
    %2 = vector.load %arg3[%c0_3, %c0_4] : memref<128x128xbf16, #tpu.memory_space<vmem>>, vector<128x128xbf16>
    %cst = arith.constant dense<0.000000e+00> : vector<8x128xf32>
    %3 = tpu.matmul %1, %2, %cst {dimension_numbers = #tpu.dot_dimension_numbers<[1], [0], [0], [1], [0, 0, 1, 1], [], []>} : vector<8x128xbf16>, vector<128x128xbf16>, vector<8x128xf32> -> vector<8x128xf32>
    %c0_5 = arith.constant 0 : index
    %c0_6 = arith.constant 0 : index
    %4 = vector.load %arg4[%c0_5, %c0_6] : memref<1x128xf32, #tpu.memory_space<vmem>>, vector<1x128xf32>
    %5 = vector.broadcast %4 : vector<1x128xf32> to vector<8x128xf32>
    %6 = arith.addf %3, %5 : vector<8x128xf32>
    %cst_7 = arith.constant 0.000000e+00 : f32
    %7 = vector.broadcast %cst_7 : f32 to vector<8x128xf32>
    %8 = arith.maximumf %6, %7 : vector<8x128xf32>
    %9 = arith.truncf %8 : vector<8x128xf32> to vector<8x128xbf16>
    %c0_8 = arith.constant 0 : index
    %c0_9 = arith.constant 0 : index
    %10 = vector.load %arg5[%c0_8, %c0_9] : memref<128x128xbf16, #tpu.memory_space<vmem>>, vector<128x128xbf16>
    %cst_10 = arith.constant dense<0.000000e+00> : vector<8x128xf32>
    %11 = tpu.matmul %9, %10, %cst_10 {dimension_numbers = #tpu.dot_dimension_numbers<[1], [0], [0], [1], [0, 0, 1, 1], [], []>} : vector<8x128xbf16>, vector<128x128xbf16>, vector<8x128xf32> -> vector<8x128xf32>
    %c0_11 = arith.constant 0 : index
    %c0_12 = arith.constant 0 : index
    %12 = vector.load %arg6[%c0_11, %c0_12] : memref<1x128xf32, #tpu.memory_space<vmem>>, vector<1x128xf32>
    %13 = vector.broadcast %12 : vector<1x128xf32> to vector<8x128xf32>
    %14 = arith.addf %11, %13 : vector<8x128xf32>
    %cst_13 = arith.constant 0.000000e+00 : f32
    %15 = vector.broadcast %cst_13 : f32 to vector<8x128xf32>
    %16 = arith.maximumf %14, %15 : vector<8x128xf32>
    %17 = arith.truncf %16 : vector<8x128xf32> to vector<8x128xbf16>
    %c0_14 = arith.constant 0 : index
    %c0_15 = arith.constant 0 : index
    %18 = vector.load %arg7[%c0_14, %c0_15] : memref<128x128xbf16, #tpu.memory_space<vmem>>, vector<128x128xbf16>
    %cst_16 = arith.constant dense<0.000000e+00> : vector<8x128xf32>
    %19 = tpu.matmul %17, %18, %cst_16 {dimension_numbers = #tpu.dot_dimension_numbers<[1], [0], [0], [1], [0, 0, 1, 1], [], []>} : vector<8x128xbf16>, vector<128x128xbf16>, vector<8x128xf32> -> vector<8x128xf32>
    %c0_17 = arith.constant 0 : index
    %c0_18 = arith.constant 0 : index
    %20 = vector.load %arg8[%c0_17, %c0_18] : memref<1x128xf32, #tpu.memory_space<vmem>>, vector<1x128xf32>
    %21 = vector.broadcast %20 : vector<1x128xf32> to vector<8x128xf32>
    %22 = arith.addf %19, %21 : vector<8x128xf32>
    %23 = math.tanh %22 : vector<8x128xf32>
    %24 = vector.broadcast %0 : f32 to vector<8x128xf32>
    %25 = arith.mulf %24, %23 : vector<8x128xf32>
    %c0_19 = arith.constant 0 : index
    %c0_20 = arith.constant 0 : index
    %26 = vector.load %arg9[%c0_19, %c0_20] : memref<8x128xf32, #tpu.memory_space<vmem>>, vector<8x128xf32>
    tpu.vector_store %arg9[%c0_19, %c0_20], %25 {strides = array<i32>} : memref<8x128xf32, #tpu.memory_space<vmem>>, vector<8x128xf32>,
    return
  }
  func.func @transform_0(%arg0: i32) -> (i32, i32) {
    %c0_i32 = arith.constant 0 : i32
    %c0_i32_0 = arith.constant 0 : i32
    %c0_i32_1 = arith.constant 0 : i32
    return %c0_i32, %c0_i32_0 : i32, i32
  }
  func.func @transform_1(%arg0: i32) -> (i32, i32) {
    %c0_i32 = arith.constant 0 : i32
    %c0_i32_0 = arith.constant 0 : i32
    return %arg0, %c0_i32 : i32, i32
  }
  func.func @transform_2(%arg0: i32) -> (i32, i32) {
    %c0_i32 = arith.constant 0 : i32
    %c0_i32_0 = arith.constant 0 : i32
    %c0_i32_1 = arith.constant 0 : i32
    return %c0_i32, %c0_i32_0 : i32, i32
  }
  func.func @transform_3(%arg0: i32) -> (i32, i32) {
    %c0_i32 = arith.constant 0 : i32
    %c0_i32_0 = arith.constant 0 : i32
    %c0_i32_1 = arith.constant 0 : i32
    return %c0_i32, %c0_i32_0 : i32, i32
  }
  func.func @transform_4(%arg0: i32) -> (i32, i32) {
    %c0_i32 = arith.constant 0 : i32
    %c0_i32_0 = arith.constant 0 : i32
    %c0_i32_1 = arith.constant 0 : i32
    return %c0_i32, %c0_i32_0 : i32, i32
  }
  func.func @transform_5(%arg0: i32) -> (i32, i32) {
    %c0_i32 = arith.constant 0 : i32
    %c0_i32_0 = arith.constant 0 : i32
    %c0_i32_1 = arith.constant 0 : i32
    return %c0_i32, %c0_i32_0 : i32, i32
  }
  func.func @transform_6(%arg0: i32) -> (i32, i32) {
    %c0_i32 = arith.constant 0 : i32
    %c0_i32_0 = arith.constant 0 : i32
    %c0_i32_1 = arith.constant 0 : i32
    return %c0_i32, %c0_i32_0 : i32, i32
  }
  func.func @transform_7(%arg0: i32) -> (i32, i32) {
    %c0_i32 = arith.constant 0 : i32
    %c0_i32_0 = arith.constant 0 : i32
    %c0_i32_1 = arith.constant 0 : i32
    return %c0_i32, %c0_i32_0 : i32, i32
  }
  func.func @transform_8(%arg0: i32) -> (i32, i32) {
    %c0_i32 = arith.constant 0 : i32
    %c0_i32_0 = arith.constant 0 : i32
    return %arg0, %c0_i32 : i32, i32
  }
}

module attributes {stable_mosaic.version = 11 : i64} {
  func.func @_actor_kernel(%arg0: i32, %arg1: memref<1x1xf32, #tpu.memory_space<smem>>, %arg2: memref<8x128xbf16, #tpu.memory_space<vmem>>, %arg3: memref<128x128xbf16, #tpu.memory_space<vmem>>, %arg4: memref<1x128xf32, #tpu.memory_space<vmem>>, %arg5: memref<128x128xbf16, #tpu.memory_space<vmem>>, %arg6: memref<1x128xf32, #tpu.memory_space<vmem>>, %arg7: memref<128x128xbf16, #tpu.memory_space<vmem>>, %arg8: memref<1x128xf32, #tpu.memory_space<vmem>>, %arg9: memref<8x128xf32, #tpu.memory_space<vmem>>) attributes {dimension_semantics = [#tpu.dimension_semantics<parallel>], iteration_bounds = array<i64: 1>, scalar_prefetch = 0 : i64, scratch_operands = 0 : i64, tpu.core_type = #tpu.core_type<tc>, window_params = [{transform_indices = @transform_0, window_bounds = array<i64: 1, 1>}, {transform_indices = @transform_1, window_bounds = array<i64: 8, 128>}, {pipeline_mode = #tpu.pipeline_mode<synchronous>, transform_indices = @transform_2, window_bounds = array<i64: 128, 128>}, {pipeline_mode = #tpu.pipeline_mode<synchronous>, transform_indices = @transform_3, window_bounds = array<i64: 1, 128>}, {pipeline_mode = #tpu.pipeline_mode<synchronous>, transform_indices = @transform_4, window_bounds = array<i64: 128, 128>}, {pipeline_mode = #tpu.pipeline_mode<synchronous>, transform_indices = @transform_5, window_bounds = array<i64: 1, 128>}, {pipeline_mode = #tpu.pipeline_mode<synchronous>, transform_indices = @transform_6, window_bounds = array<i64: 128, 128>}, {pipeline_mode = #tpu.pipeline_mode<synchronous>, transform_indices = @transform_7, window_bounds = array<i64: 1, 128>}, {transform_indices = @transform_8, window_bounds = array<i64: 8, 128>}]} {
    %c0 = arith.constant 0 : index
    %c0_0 = arith.constant 0 : index
    %0 = memref.load %arg1[%c0, %c0_0] : memref<1x1xf32, #tpu.memory_space<smem>>
    %c0_1 = arith.constant 0 : index
    %c0_2 = arith.constant 0 : index
    %1 = vector.load %arg2[%c0_1, %c0_2] : memref<8x128xbf16, #tpu.memory_space<vmem>>, vector<8x128xbf16>
    %c0_3 = arith.constant 0 : index
    %c0_4 = arith.constant 0 : index
    %2 = vector.load %arg3[%c0_3, %c0_4] : memref<128x128xbf16, #tpu.memory_space<vmem>>, vector<128x128xbf16>
    %cst = arith.constant dense<0.000000e+00> : vector<8x128xf32>
    %3 = tpu.matmul %1, %2, %cst {dimension_numbers = #tpu.dot_dimension_numbers<[1], [0], [0], [1], [0, 0, 1, 1], [], []>} : vector<8x128xbf16>, vector<128x128xbf16>, vector<8x128xf32> -> vector<8x128xf32>
    %c0_5 = arith.constant 0 : index
    %c0_6 = arith.constant 0 : index
    %4 = vector.load %arg4[%c0_5, %c0_6] : memref<1x128xf32, #tpu.memory_space<vmem>>, vector<1x128xf32>
    %5 = vector.broadcast %4 : vector<1x128xf32> to vector<8x128xf32>
    %6 = arith.addf %3, %5 : vector<8x128xf32>
    %cst_7 = arith.constant 0.000000e+00 : f32
    %7 = vector.broadcast %cst_7 : f32 to vector<8x128xf32>
    %8 = arith.maximumf %6, %7 : vector<8x128xf32>
    %9 = arith.truncf %8 : vector<8x128xf32> to vector<8x128xbf16>
    %c0_8 = arith.constant 0 : index
    %c0_9 = arith.constant 0 : index
    %10 = vector.load %arg5[%c0_8, %c0_9] : memref<128x128xbf16, #tpu.memory_space<vmem>>, vector<128x128xbf16>
    %cst_10 = arith.constant dense<0.000000e+00> : vector<8x128xf32>
    %11 = tpu.matmul %9, %10, %cst_10 {dimension_numbers = #tpu.dot_dimension_numbers<[1], [0], [0], [1], [0, 0, 1, 1], [], []>} : vector<8x128xbf16>, vector<128x128xbf16>, vector<8x128xf32> -> vector<8x128xf32>
    %c0_11 = arith.constant 0 : index
    %c0_12 = arith.constant 0 : index
    %12 = vector.load %arg6[%c0_11, %c0_12] : memref<1x128xf32, #tpu.memory_space<vmem>>, vector<1x128xf32>
    %13 = vector.broadcast %12 : vector<1x128xf32> to vector<8x128xf32>
    %14 = arith.addf %11, %13 : vector<8x128xf32>
    %cst_13 = arith.constant 0.000000e+00 : f32
    %15 = vector.broadcast %cst_13 : f32 to vector<8x128xf32>
    %16 = arith.maximumf %14, %15 : vector<8x128xf32>
    %17 = arith.truncf %16 : vector<8x128xf32> to vector<8x128xbf16>
    %c0_14 = arith.constant 0 : index
    %c0_15 = arith.constant 0 : index
    %18 = vector.load %arg7[%c0_14, %c0_15] : memref<128x128xbf16, #tpu.memory_space<vmem>>, vector<128x128xbf16>
    %cst_16 = arith.constant dense<0.000000e+00> : vector<8x128xf32>
    %19 = tpu.matmul %17, %18, %cst_16 {dimension_numbers = #tpu.dot_dimension_numbers<[1], [0], [0], [1], [0, 0, 1, 1], [], []>} : vector<8x128xbf16>, vector<128x128xbf16>, vector<8x128xf32> -> vector<8x128xf32>
    %c0_17 = arith.constant 0 : index
    %c0_18 = arith.constant 0 : index
    %20 = vector.load %arg8[%c0_17, %c0_18] : memref<1x128xf32, #tpu.memory_space<vmem>>, vector<1x128xf32>
    %21 = vector.broadcast %20 : vector<1x128xf32> to vector<8x128xf32>
    %22 = arith.addf %19, %21 : vector<8x128xf32>
    %23 = math.tanh %22 : vector<8x128xf32>
    %24 = vector.broadcast %0 : f32 to vector<8x128xf32>
    %25 = arith.mulf %24, %23 : vector<8x128xf32>
    %c0_19 = arith.constant 0 : index
    %c0_20 = arith.constant 0 : index
    %26 = vector.load %arg9[%c0_19, %c0_20] : memref<8x128xf32, #tpu.memory_space<vmem>>, vector<8x128xf32>
    tpu.vector_store %arg9[%c0_19, %c0_20], %25 {strides = array<i32>} : memref<8x128xf32, #tpu.memory_space<vmem>>, vector<8x128xf32>,
    return
  }
  func.func @transform_0(%arg0: i32) -> (i32, i32) {
    %c0_i32 = arith.constant 0 : i32
    %c0_i32_0 = arith.constant 0 : i32
    %c0_i32_1 = arith.constant 0 : i32
    return %c0_i32, %c0_i32_0 : i32, i32
  }
  func.func @transform_1(%arg0: i32) -> (i32, i32) {
    %c0_i32 = arith.constant 0 : i32
    %c0_i32_0 = arith.constant 0 : i32
    return %arg0, %c0_i32 : i32, i32
  }
  func.func @transform_2(%arg0: i32) -> (i32, i32) {
    %c0_i32 = arith.constant 0 : i32
    %c0_i32_0 = arith.constant 0 : i32
    %c0_i32_1 = arith.constant 0 : i32
    return %c0_i32, %c0_i32_0 : i32, i32
  }
  func.func @transform_3(%arg0: i32) -> (i32, i32) {
    %c0_i32 = arith.constant 0 : i32
    %c0_i32_0 = arith.constant 0 : i32
    %c0_i32_1 = arith.constant 0 : i32
    return %c0_i32, %c0_i32_0 : i32, i32
  }
  func.func @transform_4(%arg0: i32) -> (i32, i32) {
    %c0_i32 = arith.constant 0 : i32
    %c0_i32_0 = arith.constant 0 : i32
    %c0_i32_1 = arith.constant 0 : i32
    return %c0_i32, %c0_i32_0 : i32, i32
  }
  func.func @transform_5(%arg0: i32) -> (i32, i32) {
    %c0_i32 = arith.constant 0 : i32
    %c0_i32_0 = arith.constant 0 : i32
    %c0_i32_1 = arith.constant 0 : i32
    return %c0_i32, %c0_i32_0 : i32, i32
  }
  func.func @transform_6(%arg0: i32) -> (i32, i32) {
    %c0_i32 = arith.constant 0 : i32
    %c0_i32_0 = arith.constant 0 : i32
    %c0_i32_1 = arith.constant 0 : i32
    return %c0_i32, %c0_i32_0 : i32, i32
  }
  func.func @transform_7(%arg0: i32) -> (i32, i32) {
    %c0_i32 = arith.constant 0 : i32
    %c0_i32_0 = arith.constant 0 : i32
    %c0_i32_1 = arith.constant 0 : i32
    return %c0_i32, %c0_i32_0 : i32, i32
  }
  func.func @transform_8(%arg0: i32) -> (i32, i32) {
    %c0_i32 = arith.constant 0 : i32
    %c0_i32_0 = arith.constant 0 : i32
    return %arg0, %c0_i32 : i32, i32
  }
}

</mosaic_0001>

<bundles_post_ra>
// kernel: tpu_custom_call.1
= control target key start
LH: loop header
LB: loop body
LE: loop exit
PB: predicated region body
PF: predicated region fallthrough
CT: control target
= control target key end

     0   :  { %14 = vsyncpa [#allocation4], 0  ;;  %s703_s0 = inlined_call_operand.<no memory space> [shape: f32[1,1], index: 0, kind: input, shape index: {}]   ;;  %s704_s1 = inlined_call_operand.hbm [shape: bf16[8,128], index: 1, kind: input, shape index: {}]   ;;  %s705_s2 = inlined_call_operand.hbm [shape: bf16[128,128], index: 2, kind: input, shape index: {}]   ;;  %s706_s3 = inlined_call_operand.vmem [shape: f32[1,128], index: 3, kind: input, shape index: {}]   ;;  %s707_s4 = inlined_call_operand.hbm [shape: bf16[128,128], index: 4, kind: input, shape index: {}]   ;;  %s708_s5 = inlined_call_operand.vmem [shape: f32[1,128], index: 5, kind: input, shape index: {}]   ;;  %s709_s6 = inlined_call_operand.hbm [shape: bf16[128,128], index: 6, kind: input, shape index: {}]   ;;  %s710_s7 = inlined_call_operand.vmem [shape: f32[1,128], index: 7, kind: input, shape index: {}]   ;;  %s711_s8 = inlined_call_operand.hbm [shape: f32[8,128], index: 8, kind: output, shape index: {}]  }
   0x1   :  { %15 = vsyncpa [#allocation7], 0 }
   0x2   :  { %16 = vsyncpa [#allocation10], 0  ;;  %s35_s29 = sshll.u32 %s705_s2, 4  ;;  %s36_s29 = int_to_ptr.hbm [resolvable:$true] %s35_s29 }
   0x3   :  { %17 = vsyncpa [#allocation5], 0  ;;  %s624_s30 = smov [#allocation6]   ;;  %s25_s12 = sshll.u32 %s704_s1, 4  ;;  %s26_s12 = int_to_ptr.hbm [resolvable:$true] %s25_s12 }
   0x4   :  { %s37_s9 = sshll.u32 %s624_s30, 4  ;;  %s625_s13 = smov 64   ;;  %s38_s9 = int_to_ptr.vmem [resolvable:$true] %s37_s9 }
   0x5   :  { %s626_s14 = smov 4   ;;  %s627_s15 = smov [#allocation3]  }
   0x6   :  { %43 = dma.hbm_to_vmem [thread:$0]  %s36_s29, 1024, %s38_s9, [#allocation7], %s625_s13, %s625_s13, %s626_s14  }
   0x7   :  { %s27_s16 = sshll.u32 %s627_s15, 4  ;;  %s50_s19 = sshll.u32 %s707_s4, 4  ;;  %s28_s16 = int_to_ptr.vmem [resolvable:$true] %s27_s16  ;;  %s51_s19 = int_to_ptr.hbm [resolvable:$true] %s50_s19 }
   0x8   :  { %30 = dma.hbm_to_vmem [thread:$0]  %s26_s12, 64, %s28_s16, [#allocation4]  }
   0x9   :  { %s65_s21 = sshll.u32 %s709_s6, 4  ;;  %s628_s22 = smov [#allocation8]   ;;  %s66_s21 = int_to_ptr.hbm [resolvable:$true] %s65_s21 }
   0xa   :  { %s52_s23 = sshll.u32 %s628_s22, 4  ;;  %s629_s1 = smov [#allocation9]   ;;  %s53_s23 = int_to_ptr.vmem [resolvable:$true] %s52_s23 }
   0xb   :  { %58 = dma.hbm_to_vmem [thread:$0]  %s51_s19, 1024, %s53_s23, [#allocation7], %s625_s13, %s625_s13, %s626_s14  }
   0xc   :  { %s67_s24 = sshll.u32 %s629_s1, 4  ;;  %s68_s24 = int_to_ptr.vmem [resolvable:$true] %s67_s24 }
   0xd   :  { %73 = dma.hbm_to_vmem [thread:$0]  %s66_s21, 1024, %s68_s24, [#allocation10], %s625_s13, %s625_s13, %s626_s14  }
   0xe   :  { %616 = dma.done.wait [#allocation4], 64  }
   0xf   :  { %617 = vsyncadd [#allocation4], 4294967232 }
  0x10   :  { %618 = dma.done.wait [#allocation7], 2048  }
  0x11   :  { %619 = vsyncadd [#allocation7], 4294965248 }
  0x12   :  { %620 = dma.done.wait [#allocation10], 1024  }
  0x13   :  { %621 = vsyncadd [#allocation10], 4294966272  ;;  %v467_v0 = vld [vmem:[#allocation6 + $0x38] sm:$0xff]  ;;  %v466_v1 = vld [vmem:[#allocation6 + $0x30] sm:$0xff]  ;;  %v342_v40 = vstv %s703_s0  ;;  %s630_s30 = smov [#allocation11]   ;;  %s352_s11 = sshll.u32 %s711_s8, 4  ;;  %s353_s11 = int_to_ptr.hbm [resolvable:$true] %s352_s11 }
  0x14   :  { %162 = vmatpush.bf16.msra.mxu0 %v467_v0  ;;  %v475_v2 = vld [vmem:[#allocation8 + $0x38] sm:$0xff]  ;;  %v474_v3 = vld [vmem:[#allocation8 + $0x30] sm:$0xff]  ;;  %v465_v4 = vld [vmem:[#allocation6 + $0x28] sm:$0xff]  ;;  %s350_s9 = sshll.u32 %s630_s30, 4  ;;  %s351_s9 = int_to_ptr.vmem [resolvable:$true] %s350_s9 }
  0x15   :  { %245 = vmatpush.bf16.msra.mxu1 %v475_v2  ;;  %v473_v5 = vld [vmem:[#allocation8 + $0x28] sm:$0xff]  ;;  %v464_v6 = vld [vmem:[#allocation6 + $0x20] sm:$0xff]  ;;  %v463_v8 = vld [vmem:[#allocation6 + $0x18] sm:$0xff] }
  0x16   :  { %v472_v7 = vld [vmem:[#allocation8 + $0x20] sm:$0xff]  ;;  %v471_v9 = vld [vmem:[#allocation8 + $0x18] sm:$0xff]  ;;  %v462_v10 = vld [vmem:[#allocation6 + $0x10] sm:$0xff] }
  0x17   :  { %v470_v11 = vld [vmem:[#allocation8 + $0x10] sm:$0xff]  ;;  %v461_v12 = vld [vmem:[#allocation6 + $0x8] sm:$0xff]  ;;  %v460_v13 = vld [vmem:[#allocation6] sm:$0xff] }
  0x18   :  { %163 = vmatpush.bf16.msra.mxu0 %v466_v1  ;;  %v93_v14 = vld [vmem:[#allocation3] sm:$0xf]  ;;  %v469_v15 = vld [vmem:[#allocation8 + $0x8] sm:$0xff]  ;;  %v468_v16 = vld [vmem:[#allocation8] sm:$0xff] }
  0x19   :  { %246 = vmatpush.bf16.msra.mxu1 %v474_v3  ;;  %v483_v17 = vld [vmem:[#allocation9 + $0x38] sm:$0xff]  ;;  %v482_v18 = vld [vmem:[#allocation9 + $0x30] sm:$0xff]  ;;  %v481_v19 = vld [vmem:[#allocation9 + $0x28] sm:$0xff] }
  0x1a   :  { %328 = vmatpush.bf16.msra.mxu2 %v483_v17  ;;  %v480_v20 = vld [vmem:[#allocation9 + $0x20] sm:$0xff]  ;;  %v479_v21 = vld [vmem:[#allocation9 + $0x18] sm:$0xff]  ;;  %v478_v22 = vld [vmem:[#allocation9 + $0x10] sm:$0xff] }
  0x1b   :  { %v491_v23 = vld [vmem:[%s706_s3] ss:$0 sm:$0xff]  ;;  %v477_v29 = vld [vmem:[#allocation9 + $0x8] sm:$0xff]  ;;  %v476_v30 = vld [vmem:[#allocation9] sm:$0xff] }
  0x1c   :  { %164 = vmatpush.bf16.msra.mxu0 %v465_v4  ;;  %v492_v31 = vld [vmem:[%s708_s5] ss:$0 sm:$0xff] }
  0x1d   :  { %247 = vmatpush.bf16.msra.mxu1 %v473_v5  ;;  %v493_v37 = vld [vmem:[%s710_s7] ss:$0 sm:$0xff] }
  0x1e   :  { %329 = vmatpush.bf16.msra.mxu2 %v482_v18 }
  0x20   :  { %165 = vmatpush.bf16.msra.mxu0 %v464_v6 }
  0x21   :  { %248 = vmatpush.bf16.msra.mxu1 %v472_v7 }
  0x22   :  { %330 = vmatpush.bf16.msra.mxu2 %v481_v19 }
  0x24   :  { %166 = vmatpush.bf16.msra.mxu0 %v463_v8 }
  0x25   :  { %249 = vmatpush.bf16.msra.mxu1 %v471_v9 }
  0x26   :  { %331 = vmatpush.bf16.msra.mxu2 %v480_v20 }
  0x28   :  { %167 = vmatpush.bf16.msra.mxu0 %v462_v10 }
  0x29   :  { %250 = vmatpush.bf16.msra.mxu1 %v470_v11 }
  0x2a   :  { %332 = vmatpush.bf16.msra.mxu2 %v479_v21 }
  0x2c   :  { %168 = vmatpush.bf16.msra.mxu0 %v461_v12 }
  0x2d   :  { %251 = vmatpush.bf16.msra.mxu1 %v469_v15 }
  0x2e   :  { %333 = vmatpush.bf16.msra.mxu2 %v478_v22 }
  0x30   :  { %169 = vmatpush.bf16.msra.mxu0 %v460_v13 }
  0x31   :  { %252 = vmatpush.bf16.msra.mxu1 %v468_v16 }
  0x32   :  { %334 = vmatpush.bf16.msra.mxu2 %v477_v29 }
  0x33   :  { %170 = vmatmul.bf16.vlgmr.msra.gmra.mxu0 %v93_v14 }
  0x36   :  { %335 = vmatpush.bf16.msra.mxu2 %v476_v30 }
  0xb0   :  { %v171_v24 = vpop.f32.mrf.mxu0 }
  0xb1   :  { %v172_v25 = vadd.f32 %v491_v23, %v171_v24 }
  0xb3   :  { %v175_v26 = vmax.f32 %v172_v25, 0.0 }
  0xb5   :  { %v176_v27 = vpack.c.bf16 %v175_v26, %v175_v26 }
  0xb7   :  { %253 = vmatmul.bf16.vlgmr.msra.gmra.mxu1 %v176_v27 }
  0xb8   :  { %v173_v28 = vpop.f32.mrf.mxu0 }
 0x134   :  { %v254_v32 = vpop.f32.mrf.mxu1 }
 0x135   :  { %v255_v33 = vadd.f32 %v492_v31, %v254_v32 }
 0x137   :  { %v258_v34 = vmax.f32 %v255_v33, 0.0 }
 0x139   :  { %v259_v35 = vpack.c.bf16 %v258_v34, %v258_v34 }
 0x13b   :  { %336 = vmatmul.bf16.vlgmr.msra.gmra.mxu2 %v259_v35 }
 0x13c   :  { %v256_v36 = vpop.f32.mrf.mxu1 }
 0x1be   :  { %v337_v38 = vpop.f32.mrf.mxu2 }
 0x1bf   :  { %v338_v39 = vadd.f32 %v493_v37, %v337_v38 }
 0x1c1   :  { %494 = vtanh.f32 %v338_v39 }
 0x1c6   :  { %v339_v41 = vpop.f32.mrf.mxu2 }
 0x1c7   :  { %v495_v42 = vpop.eup %494 }
 0x1c8   :  { %v343_v43 = vmul.f32 %v495_v42, %v342_v40 }
 0x1ca   :  { %344 = vst [vmem:[#allocation11] sm:$0xff] %v343_v43 }
 0x1cb   :  { %355 = dma.vmem_to_hbm [thread:$0]  %s351_s9, 128, %s353_s11, [#allocation5]  }
 0x1cc   :  { %622 = dma.done.wait [#allocation5], 128  }
 0x1cd   :  { %623 = vsyncadd [#allocation5], 4294967168 }
 0x1ce   :  { %360 = vsyncpa [#allocation4], 1 }
 0x1cf   :  { %361 = vsyncpa [#allocation7], 1 }
 0x1d0   :  { %362 = vsyncpa [#allocation10], 1 }
 0x1d1   :  { %363 = vsyncpa [#allocation5], 1 }

// kernel: tpu_custom_call.1
= control target key start
LH: loop header
LB: loop body
LE: loop exit
PB: predicated region body
PF: predicated region fallthrough
CT: control target
= control target key end

     0   :  { %14 = vsyncpa [#allocation4], 0  ;;  %s703_s0 = inlined_call_operand.<no memory space> [shape: f32[1,1], index: 0, kind: input, shape index: {}]   ;;  %s704_s1 = inlined_call_operand.hbm [shape: bf16[8,128], index: 1, kind: input, shape index: {}]   ;;  %s705_s2 = inlined_call_operand.hbm [shape: bf16[128,128], index: 2, kind: input, shape index: {}]   ;;  %s706_s3 = inlined_call_operand.vmem [shape: f32[1,128], index: 3, kind: input, shape index: {}]   ;;  %s707_s4 = inlined_call_operand.hbm [shape: bf16[128,128], index: 4, kind: input, shape index: {}]   ;;  %s708_s5 = inlined_call_operand.vmem [shape: f32[1,128], index: 5, kind: input, shape index: {}]   ;;  %s709_s6 = inlined_call_operand.hbm [shape: bf16[128,128], index: 6, kind: input, shape index: {}]   ;;  %s710_s7 = inlined_call_operand.vmem [shape: f32[1,128], index: 7, kind: input, shape index: {}]   ;;  %s711_s8 = inlined_call_operand.hbm [shape: f32[8,128], index: 8, kind: output, shape index: {}]  }
   0x1   :  { %15 = vsyncpa [#allocation7], 0 }
   0x2   :  { %16 = vsyncpa [#allocation10], 0  ;;  %s35_s29 = sshll.u32 %s705_s2, 4  ;;  %s36_s29 = int_to_ptr.hbm [resolvable:$true] %s35_s29 }
   0x3   :  { %17 = vsyncpa [#allocation5], 0  ;;  %s624_s30 = smov [#allocation6]   ;;  %s25_s12 = sshll.u32 %s704_s1, 4  ;;  %s26_s12 = int_to_ptr.hbm [resolvable:$true] %s25_s12 }
   0x4   :  { %s37_s9 = sshll.u32 %s624_s30, 4  ;;  %s625_s13 = smov 64   ;;  %s38_s9 = int_to_ptr.vmem [resolvable:$true] %s37_s9 }
   0x5   :  { %s626_s14 = smov 4   ;;  %s627_s15 = smov [#allocation3]  }
   0x6   :  { %43 = dma.hbm_to_vmem [thread:$0]  %s36_s29, 1024, %s38_s9, [#allocation7], %s625_s13, %s625_s13, %s626_s14  }
   0x7   :  { %s27_s16 = sshll.u32 %s627_s15, 4  ;;  %s50_s19 = sshll.u32 %s707_s4, 4  ;;  %s28_s16 = int_to_ptr.vmem [resolvable:$true] %s27_s16  ;;  %s51_s19 = int_to_ptr.hbm [resolvable:$true] %s50_s19 }
   0x8   :  { %30 = dma.hbm_to_vmem [thread:$0]  %s26_s12, 64, %s28_s16, [#allocation4]  }
   0x9   :  { %s65_s21 = sshll.u32 %s709_s6, 4  ;;  %s628_s22 = smov [#allocation8]   ;;  %s66_s21 = int_to_ptr.hbm [resolvable:$true] %s65_s21 }
   0xa   :  { %s52_s23 = sshll.u32 %s628_s22, 4  ;;  %s629_s1 = smov [#allocation9]   ;;  %s53_s23 = int_to_ptr.vmem [resolvable:$true] %s52_s23 }
   0xb   :  { %58 = dma.hbm_to_vmem [thread:$0]  %s51_s19, 1024, %s53_s23, [#allocation7], %s625_s13, %s625_s13, %s626_s14  }
   0xc   :  { %s67_s24 = sshll.u32 %s629_s1, 4  ;;  %s68_s24 = int_to_ptr.vmem [resolvable:$true] %s67_s24 }
   0xd   :  { %73 = dma.hbm_to_vmem [thread:$0]  %s66_s21, 1024, %s68_s24, [#allocation10], %s625_s13, %s625_s13, %s626_s14  }
   0xe   :  { %616 = dma.done.wait [#allocation4], 64  }
   0xf   :  { %617 = vsyncadd [#allocation4], 4294967232 }
  0x10   :  { %618 = dma.done.wait [#allocation7], 2048  }
  0x11   :  { %619 = vsyncadd [#allocation7], 4294965248 }
  0x12   :  { %620 = dma.done.wait [#allocation10], 1024  }
  0x13   :  { %621 = vsyncadd [#allocation10], 4294966272  ;;  %v467_v0 = vld [vmem:[#allocation6 + $0x38] sm:$0xff]  ;;  %v466_v1 = vld [vmem:[#allocation6 + $0x30] sm:$0xff]  ;;  %v342_v40 = vstv %s703_s0  ;;  %s630_s30 = smov [#allocation11]   ;;  %s352_s11 = sshll.u32 %s711_s8, 4  ;;  %s353_s11 = int_to_ptr.hbm [resolvable:$true] %s352_s11 }
  0x14   :  { %162 = vmatpush.bf16.msra.mxu0 %v467_v0  ;;  %v475_v2 = vld [vmem:[#allocation8 + $0x38] sm:$0xff]  ;;  %v474_v3 = vld [vmem:[#allocation8 + $0x30] sm:$0xff]  ;;  %v465_v4 = vld [vmem:[#allocation6 + $0x28] sm:$0xff]  ;;  %s350_s9 = sshll.u32 %s630_s30, 4  ;;  %s351_s9 = int_to_ptr.vmem [resolvable:$true] %s350_s9 }
  0x15   :  { %245 = vmatpush.bf16.msra.mxu1 %v475_v2  ;;  %v473_v5 = vld [vmem:[#allocation8 + $0x28] sm:$0xff]  ;;  %v464_v6 = vld [vmem:[#allocation6 + $0x20] sm:$0xff]  ;;  %v463_v8 = vld [vmem:[#allocation6 + $0x18] sm:$0xff] }
  0x16   :  { %v472_v7 = vld [vmem:[#allocation8 + $0x20] sm:$0xff]  ;;  %v471_v9 = vld [vmem:[#allocation8 + $0x18] sm:$0xff]  ;;  %v462_v10 = vld [vmem:[#allocation6 + $0x10] sm:$0xff] }
  0x17   :  { %v470_v11 = vld [vmem:[#allocation8 + $0x10] sm:$0xff]  ;;  %v461_v12 = vld [vmem:[#allocation6 + $0x8] sm:$0xff]  ;;  %v460_v13 = vld [vmem:[#allocation6] sm:$0xff] }
  0x18   :  { %163 = vmatpush.bf16.msra.mxu0 %v466_v1  ;;  %v93_v14 = vld [vmem:[#allocation3] sm:$0xf]  ;;  %v469_v15 = vld [vmem:[#allocation8 + $0x8] sm:$0xff]  ;;  %v468_v16 = vld [vmem:[#allocation8] sm:$0xff] }
  0x19   :  { %246 = vmatpush.bf16.msra.mxu1 %v474_v3  ;;  %v483_v17 = vld [vmem:[#allocation9 + $0x38] sm:$0xff]  ;;  %v482_v18 = vld [vmem:[#allocation9 + $0x30] sm:$0xff]  ;;  %v481_v19 = vld [vmem:[#allocation9 + $0x28] sm:$0xff] }
  0x1a   :  { %328 = vmatpush.bf16.msra.mxu2 %v483_v17  ;;  %v480_v20 = vld [vmem:[#allocation9 + $0x20] sm:$0xff]  ;;  %v479_v21 = vld [vmem:[#allocation9 + $0x18] sm:$0xff]  ;;  %v478_v22 = vld [vmem:[#allocation9 + $0x10] sm:$0xff] }
  0x1b   :  { %v491_v23 = vld [vmem:[%s706_s3] ss:$0 sm:$0xff]  ;;  %v477_v29 = vld [vmem:[#allocation9 + $0x8] sm:$0xff]  ;;  %v476_v30 = vld [vmem:[#allocation9] sm:$0xff] }
  0x1c   :  { %164 = vmatpush.bf16.msra.mxu0 %v465_v4  ;;  %v492_v31 = vld [vmem:[%s708_s5] ss:$0 sm:$0xff] }
  0x1d   :  { %247 = vmatpush.bf16.msra.mxu1 %v473_v5  ;;  %v493_v37 = vld [vmem:[%s710_s7] ss:$0 sm:$0xff] }
  0x1e   :  { %329 = vmatpush.bf16.msra.mxu2 %v482_v18 }
  0x20   :  { %165 = vmatpush.bf16.msra.mxu0 %v464_v6 }
  0x21   :  { %248 = vmatpush.bf16.msra.mxu1 %v472_v7 }
  0x22   :  { %330 = vmatpush.bf16.msra.mxu2 %v481_v19 }
  0x24   :  { %166 = vmatpush.bf16.msra.mxu0 %v463_v8 }
  0x25   :  { %249 = vmatpush.bf16.msra.mxu1 %v471_v9 }
  0x26   :  { %331 = vmatpush.bf16.msra.mxu2 %v480_v20 }
  0x28   :  { %167 = vmatpush.bf16.msra.mxu0 %v462_v10 }
  0x29   :  { %250 = vmatpush.bf16.msra.mxu1 %v470_v11 }
  0x2a   :  { %332 = vmatpush.bf16.msra.mxu2 %v479_v21 }
  0x2c   :  { %168 = vmatpush.bf16.msra.mxu0 %v461_v12 }
  0x2d   :  { %251 = vmatpush.bf16.msra.mxu1 %v469_v15 }
  0x2e   :  { %333 = vmatpush.bf16.msra.mxu2 %v478_v22 }
  0x30   :  { %169 = vmatpush.bf16.msra.mxu0 %v460_v13 }
  0x31   :  { %252 = vmatpush.bf16.msra.mxu1 %v468_v16 }
  0x32   :  { %334 = vmatpush.bf16.msra.mxu2 %v477_v29 }
  0x33   :  { %170 = vmatmul.bf16.vlgmr.msra.gmra.mxu0 %v93_v14 }
  0x36   :  { %335 = vmatpush.bf16.msra.mxu2 %v476_v30 }
  0xb0   :  { %v171_v24 = vpop.f32.mrf.mxu0 }
  0xb1   :  { %v172_v25 = vadd.f32 %v491_v23, %v171_v24 }
  0xb3   :  { %v175_v26 = vmax.f32 %v172_v25, 0.0 }
  0xb5   :  { %v176_v27 = vpack.c.bf16 %v175_v26, %v175_v26 }
  0xb7   :  { %253 = vmatmul.bf16.vlgmr.msra.gmra.mxu1 %v176_v27 }
  0xb8   :  { %v173_v28 = vpop.f32.mrf.mxu0 }
 0x134   :  { %v254_v32 = vpop.f32.mrf.mxu1 }
 0x135   :  { %v255_v33 = vadd.f32 %v492_v31, %v254_v32 }
 0x137   :  { %v258_v34 = vmax.f32 %v255_v33, 0.0 }
 0x139   :  { %v259_v35 = vpack.c.bf16 %v258_v34, %v258_v34 }
 0x13b   :  { %336 = vmatmul.bf16.vlgmr.msra.gmra.mxu2 %v259_v35 }
 0x13c   :  { %v256_v36 = vpop.f32.mrf.mxu1 }
 0x1be   :  { %v337_v38 = vpop.f32.mrf.mxu2 }
 0x1bf   :  { %v338_v39 = vadd.f32 %v493_v37, %v337_v38 }
 0x1c1   :  { %494 = vtanh.f32 %v338_v39 }
 0x1c6   :  { %v339_v41 = vpop.f32.mrf.mxu2 }
 0x1c7   :  { %v495_v42 = vpop.eup %494 }
 0x1c8   :  { %v343_v43 = vmul.f32 %v495_v42, %v342_v40 }
 0x1ca   :  { %344 = vst [vmem:[#allocation11] sm:$0xff] %v343_v43 }
 0x1cb   :  { %355 = dma.vmem_to_hbm [thread:$0]  %s351_s9, 128, %s353_s11, [#allocation5]  }
 0x1cc   :  { %622 = dma.done.wait [#allocation5], 128  }
 0x1cd   :  { %623 = vsyncadd [#allocation5], 4294967168 }
 0x1ce   :  { %360 = vsyncpa [#allocation4], 1 }
 0x1cf   :  { %361 = vsyncpa [#allocation7], 1 }
 0x1d0   :  { %362 = vsyncpa [#allocation10], 1 }
 0x1d1   :  { %363 = vsyncpa [#allocation5], 1 }

</bundles_post_ra>
